<compile_context>
chip_gen: v5e
topology: v5e:2x2
jax: 0.10.0
libtpu: 0.0.40
codegen_flags: <defaults>
</compile_context>

<pallas_src>
import numpy as np
import jax
import jax.numpy as jnp
from jax.experimental import pallas as pl
from jax.experimental.pallas import tpu as pltpu


def _num_batch_blocks(batch):
    """1 grid step on single-TensorCore chips (v5e/v6e); exactly 2 on v7x (2 TCs)."""
    try:
        kind = jax.devices()[0].device_kind.lower()
    except Exception:
        kind = ""
    if ("v7" in kind or "7x" in kind) and batch >= 2 and batch % 2 == 0:
        return 2
    return 1


def dgtl_gcn_forward(x, support, w_adj, weights, train_len, num_batch_blocks=None):
    """Batched DGTL GCN forward.

    x:       (B, N, F_in, T) float32   (B=1 reproduces the unbatched module forward)
    support: (B, N, N, T)    float32
    w_adj:   (T, 1) or (T,)  float32   (nn.Parameter w_adj_weight)
    weights: [(F_in, H1), (H1, out_dim)] GraphConvolution weights
    returns: (B, N, out_dim) float32 softmax probabilities
    """
    B, N, F_in, T = x.shape
    out_dim = weights[-1].shape[1]
    OUT_PAD = ((out_dim + 127) // 128) * 128

    G = _num_batch_blocks(B) if num_batch_blocks is None else num_batch_blocks
    assert B % G == 0, "batch must divide evenly into grid blocks"
    BG = B // G            # graphs per grid block
    BGN = BG * N

    # ---- wrapper-side layout plumbing (pure XLA, outside the kernel) ----
    def to_block_layout(a):
        # (B, N, C, T) -> (G, T*BG*N, C): T outermost within a block so the kernel's
        # time contraction is one contiguous (BG*N, C) multiply-add slab per t.
        C = a.shape[2]
        a = jnp.transpose(a, (0, 3, 1, 2))                 # (B, T, N, C)
        a = a.reshape(G, BG, T, N, C)
        a = jnp.transpose(a, (0, 2, 1, 3, 4))              # (G, T, BG, N, C)
        return a.reshape(G, T * BGN, C).astype(jnp.float32)

    sup_l = to_block_layout(support)   # (G, T*BG*N, N)
    x_l = to_block_layout(x)           # (G, T*BG*N, F_in)

    # SMEM scalars: w_adj for the support contraction, pre-scaled copy (1/train_len)
    # for the feature contraction.
    wadj_flat = jnp.reshape(w_adj, (T,)).astype(jnp.float32)
    wadj_all = jnp.concatenate([wadj_flat, wadj_flat / jnp.float32(train_len)])  # (2T,)

    # Zero-pad the last layer weight so the stored output is lane-dense (128-multiple).
    w_last = weights[-1]
    if OUT_PAD != out_dim:
        w_last = jnp.pad(w_last, ((0, 0), (0, OUT_PAD - out_dim)))
    kweights = [w.astype(jnp.float32) for w in weights[:-1]] + [w_last.astype(jnp.float32)]

    def kernel(wadj_ref, sup_ref, x_ref, *rest):
        # wadj_ref: SMEM (2T,); sup_ref: VMEM (T*BG*N, N); x_ref: VMEM (T*BG*N, F_in)
        w_refs = rest[:-1]
        out_ref = rest[-1]

        # ---- time contraction: sum_t w[t]*A[t]; one (BG*N, .) VPU slab per t ----
        sup_c = sup_ref[0:BGN, :] * wadj_ref[0]
        xc = x_ref[0:BGN, :] * wadj_ref[T]                 # already scaled by 1/train_len
        for t in range(1, T):
            sup_c = sup_c + sup_ref[t * BGN:(t + 1) * BGN, :] * wadj_ref[t]
            xc = xc + x_ref[t * BGN:(t + 1) * BGN, :] * wadj_ref[T + t]

        # ---- symmetric normalization kept as a (BG*N, 1) row-scale vector ----
        rowsum = jnp.sum(sup_c, axis=1, keepdims=True)     # per-graph row sums
        d = jax.lax.rsqrt(rowsum)                          # EUP rsqrt
        d = jnp.where(jnp.isinf(d), jnp.float32(0.0), d)   # zero-degree guard

        # ---- GraphConvolution stack: (D S D)@(h@W) == d * (S @ (d*(h@W))) ----
        # Dense h@W is fused across all BG graphs in the block (MXU M-dim = BG*N);
        # the per-graph S @ (d*xw) propagation is a short unrolled loop.
        h = xc
        for w_ref in w_refs:
            xw = jnp.dot(h, w_ref[...], preferred_element_type=jnp.float32)
            sx = d * xw
            parts = [
                jnp.dot(sup_c[g * N:(g + 1) * N, :], sx[g * N:(g + 1) * N, :],
                        preferred_element_type=jnp.float32)
                for g in range(BG)
            ]
            prop = parts[0] if BG == 1 else jnp.concatenate(parts, axis=0)
            h = d * prop
            h = jnp.maximum(h, 0.01 * h)                   # F.leaky_relu (slope 0.01)

        # ---- row softmax (dim=1); mask lane-padding columns; exact divide ----
        if OUT_PAD != out_dim:
            col = jax.lax.broadcasted_iota(jnp.int32, (BGN, OUT_PAD), 1)
            h = jnp.where(col < out_dim, h, jnp.float32(-1e30))
        m = jnp.max(h, axis=1, keepdims=True)
        e = jnp.exp(h - m)
        s = jnp.sum(e, axis=1, keepdims=True)
        out_ref[...] = e / s

    grid_spec = pltpu.PrefetchScalarGridSpec(
        num_scalar_prefetch=1,                             # w_adj scalars -> SMEM
        grid=(G,),
        in_specs=[
            pl.BlockSpec((None, T * BGN, N), lambda g, wadj: (g, 0, 0)),
            pl.BlockSpec((None, T * BGN, F_in), lambda g, wadj: (g, 0, 0)),
        ] + [
            pl.BlockSpec(w.shape, lambda g, wadj: (0, 0)) for w in kweights
        ],
        out_specs=pl.BlockSpec((BGN, OUT_PAD), lambda g, wadj: (g, 0)),
    )

    out = pl.pallas_call(
        kernel,
        out_shape=jax.ShapeDtypeStruct((B * N, OUT_PAD), jnp.float32),
        grid_spec=grid_spec,
        compiler_params=pltpu.CompilerParams(
            dimension_semantics=("parallel",),             # 2-block axis shards on v7x
        ),
    )(wadj_all, sup_l, x_l, *kweights)

    # TODO(synk): if B*N grows, return the padded lane-dense slab and let the consumer
    #             slice, to avoid this extra XLA copy after the kernel.
    return out.reshape(B, N, OUT_PAD)[:, :, :out_dim]


def make_params(key, input_dim, hidden, train_len):
    """glorot_init-style weights + w_adj_weight = ones(T,1), mirroring the module."""
    dims = [input_dim] + hidden
    weights = []
    for i in range(len(hidden)):
        key, sub = jax.random.split(key)
        r = np.sqrt(6.0 / (dims[i] + dims[i + 1]))
        weights.append(jax.random.uniform(sub, (dims[i], dims[i + 1]),
                                          jnp.float32, minval=-r, maxval=r))
    w_adj = jnp.ones((train_len, 1), jnp.float32)
    return weights, w_adj


def reference_forward(x, support, w_adj, weights, train_len):
    """Pure-JAX mirror of the PyTorch forward (single graph) for validation."""
    s = jnp.squeeze(jnp.matmul(support, w_adj), axis=2)          # (N, N)
    rowsum = jnp.sum(s, axis=1)
    xx = jnp.squeeze(jnp.matmul(x, w_adj), axis=2) / train_len   # (N, F_in)
    d = rowsum ** -0.5
    d = jnp.where(jnp.isinf(d), 0.0, d)
    D = jnp.diag(d)
    s = D @ s @ D
    h = xx
    for W in weights:
        h = s @ (h @ W)
        h = jnp.where(h >= 0, h, 0.01 * h)
    return jax.nn.softmax(h, axis=1)


if __name__ == "__main__":
    # Small config consistent with DGTL_model(Gmodel='GCN', dropout=[0,0]):
    B = 4             # graphs per call (folded into 1 or 2 grid blocks)
    N = 16            # nodes per graph
    input_dim = 32
    hidden = [32, 8]  # hidden[-1] == output_dim
    output_dim = hidden[-1]
    train_len = 4

    key = jax.random.PRNGKey(0)
    k_x, k_s, k_p = jax.random.split(key, 3)

    x = jax.random.uniform(k_x, (B, N, input_dim, train_len), jnp.float32)
    support = jax.random.uniform(k_s, (B, N, N, train_len), jnp.float32)
    weights, w_adj = make_params(k_p, input_dim, hidden, train_len)

    prob = dgtl_gcn_forward(x, support, w_adj, weights, train_len)
    prob = jax.block_until_ready(prob)

    ref = jax.vmap(
        lambda xb, sb: reference_forward(xb, sb, w_adj, weights, train_len)
    )(x, support)

    assert prob.shape == (B, N, output_dim)
    assert bool(jnp.all(jnp.isfinite(prob)))
    assert bool(jnp.allclose(jnp.sum(prob, axis=-1), 1.0, atol=1e-4))
    assert bool(jnp.allclose(prob, ref, atol=1e-3, rtol=1e-3))
    print("KERNEL_OK")
</pallas_src>

<mosaic_0001>
module attributes {stable_mosaic.version = 11 : i64} {
  func.func @kernel(%arg0: i32, %arg1: memref<8xf32, #tpu.memory_space<smem>>, %arg2: memref<1x256x16xf32, #tpu.memory_space<vmem>>, %arg3: memref<1x256x32xf32, #tpu.memory_space<vmem>>, %arg4: memref<32x32xf32, #tpu.memory_space<vmem>>, %arg5: memref<32x128xf32, #tpu.memory_space<vmem>>, %arg6: memref<64x128xf32, #tpu.memory_space<vmem>>) attributes {dimension_semantics = [#tpu.dimension_semantics<parallel>], iteration_bounds = array<i64: 1>, scalar_prefetch = 1 : i64, scratch_operands = 0 : i64, tpu.core_type = #tpu.core_type<tc>, window_params = [{transform_indices = @transform_0, window_bounds = array<i64: 1, 256, 16>}, {transform_indices = @transform_1, window_bounds = array<i64: 1, 256, 32>}, {pipeline_mode = #tpu.pipeline_mode<synchronous>, transform_indices = @transform_2, window_bounds = array<i64: 32, 32>}, {pipeline_mode = #tpu.pipeline_mode<synchronous>, transform_indices = @transform_3, window_bounds = array<i64: 32, 128>}, {transform_indices = @transform_4, window_bounds = array<i64: 64, 128>}]} {
    %c0 = arith.constant 0 : index
    %c0_0 = arith.constant 0 : index
    %c0_1 = arith.constant 0 : index
    %0 = vector.load %arg2[%c0, %c0_0, %c0_1] : memref<1x256x16xf32, #tpu.memory_space<vmem>>, vector<1x64x16xf32>
    %1 = vector.shape_cast %0 : vector<1x64x16xf32> to vector<64x16xf32>
    %c0_2 = arith.constant 0 : index
    %2 = memref.load %arg1[%c0_2] : memref<8xf32, #tpu.memory_space<smem>>
    %3 = vector.broadcast %2 : f32 to vector<64x16xf32>
    %4 = arith.mulf %1, %3 : vector<64x16xf32>
    %c0_3 = arith.constant 0 : index
    %c0_4 = arith.constant 0 : index
    %c0_5 = arith.constant 0 : index
    %5 = vector.load %arg3[%c0_3, %c0_4, %c0_5] : memref<1x256x32xf32, #tpu.memory_space<vmem>>, vector<1x64x32xf32>
    %6 = vector.shape_cast %5 : vector<1x64x32xf32> to vector<64x32xf32>
    %c4 = arith.constant 4 : index
    %7 = memref.load %arg1[%c4] : memref<8xf32, #tpu.memory_space<smem>>
    %8 = vector.broadcast %7 : f32 to vector<64x32xf32>
    %9 = arith.mulf %6, %8 : vector<64x32xf32>
    %c0_6 = arith.constant 0 : index
    %c64 = arith.constant 64 : index
    %c0_7 = arith.constant 0 : index
    %10 = vector.load %arg2[%c0_6, %c64, %c0_7] : memref<1x256x16xf32, #tpu.memory_space<vmem>>, vector<1x64x16xf32>
    %11 = vector.shape_cast %10 : vector<1x64x16xf32> to vector<64x16xf32>
    %c1 = arith.constant 1 : index
    %12 = memref.load %arg1[%c1] : memref<8xf32, #tpu.memory_space<smem>>
    %13 = vector.broadcast %12 : f32 to vector<64x16xf32>
    %14 = arith.mulf %11, %13 : vector<64x16xf32>
    %15 = arith.addf %4, %14 : vector<64x16xf32>
    %c0_8 = arith.constant 0 : index
    %c64_9 = arith.constant 64 : index
    %c0_10 = arith.constant 0 : index
    %16 = vector.load %arg3[%c0_8, %c64_9, %c0_10] : memref<1x256x32xf32, #tpu.memory_space<vmem>>, vector<1x64x32xf32>
    %17 = vector.shape_cast %16 : vector<1x64x32xf32> to vector<64x32xf32>
    %c5 = arith.constant 5 : index
    %18 = memref.load %arg1[%c5] : memref<8xf32, #tpu.memory_space<smem>>
    %19 = vector.broadcast %18 : f32 to vector<64x32xf32>
    %20 = arith.mulf %17, %19 : vector<64x32xf32>
    %21 = arith.addf %9, %20 : vector<64x32xf32>
    %c0_11 = arith.constant 0 : index
    %c128 = arith.constant 128 : index
    %c0_12 = arith.constant 0 : index
    %22 = vector.load %arg2[%c0_11, %c128, %c0_12] : memref<1x256x16xf32, #tpu.memory_space<vmem>>, vector<1x64x16xf32>
    %23 = vector.shape_cast %22 : vector<1x64x16xf32> to vector<64x16xf32>
    %c2 = arith.constant 2 : index
    %24 = memref.load %arg1[%c2] : memref<8xf32, #tpu.memory_space<smem>>
    %25 = vector.broadcast %24 : f32 to vector<64x16xf32>
    %26 = arith.mulf %23, %25 : vector<64x16xf32>
    %27 = arith.addf %15, %26 : vector<64x16xf32>
    %c0_13 = arith.constant 0 : index
    %c128_14 = arith.constant 128 : index
    %c0_15 = arith.constant 0 : index
    %28 = vector.load %arg3[%c0_13, %c128_14, %c0_15] : memref<1x256x32xf32, #tpu.memory_space<vmem>>, vector<1x64x32xf32>
    %29 = vector.shape_cast %28 : vector<1x64x32xf32> to vector<64x32xf32>
    %c6 = arith.constant 6 : index
    %30 = memref.load %arg1[%c6] : memref<8xf32, #tpu.memory_space<smem>>
    %31 = vector.broadcast %30 : f32 to vector<64x32xf32>
    %32 = arith.mulf %29, %31 : vector<64x32xf32>
    %33 = arith.addf %21, %32 : vector<64x32xf32>
    %c0_16 = arith.constant 0 : index
    %c192 = arith.constant 192 : index
    %c0_17 = arith.constant 0 : index
    %34 = vector.load %arg2[%c0_16, %c192, %c0_17] : memref<1x256x16xf32, #tpu.memory_space<vmem>>, vector<1x64x16xf32>
    %35 = vector.shape_cast %34 : vector<1x64x16xf32> to vector<64x16xf32>
    %c3 = arith.constant 3 : index
    %36 = memref.load %arg1[%c3] : memref<8xf32, #tpu.memory_space<smem>>
    %37 = vector.broadcast %36 : f32 to vector<64x16xf32>
    %38 = arith.mulf %35, %37 : vector<64x16xf32>
    %39 = arith.addf %27, %38 : vector<64x16xf32>
    %c0_18 = arith.constant 0 : index
    %c192_19 = arith.constant 192 : index
    %c0_20 = arith.constant 0 : index
    %40 = vector.load %arg3[%c0_18, %c192_19, %c0_20] : memref<1x256x32xf32, #tpu.memory_space<vmem>>, vector<1x64x32xf32>
    %41 = vector.shape_cast %40 : vector<1x64x32xf32> to vector<64x32xf32>
    %c7 = arith.constant 7 : index
    %42 = memref.load %arg1[%c7] : memref<8xf32, #tpu.memory_space<smem>>
    %43 = vector.broadcast %42 : f32 to vector<64x32xf32>
    %44 = arith.mulf %41, %43 : vector<64x32xf32>
    %45 = arith.addf %33, %44 : vector<64x32xf32>
    %cst = arith.constant dense<0.000000e+00> : vector<64xf32>
    %46 = vector.multi_reduction <add>, %39, %cst [1] : vector<64x16xf32> to vector<64xf32>
    %47 = vector.shape_cast %46 : vector<64xf32> to vector<64x1xf32>
    %48 = math.rsqrt %47 : vector<64x1xf32>
    %49 = math.absf %48 : vector<64x1xf32>
    %cst_21 = arith.constant 0x7F800000 : f32
    %50 = vector.broadcast %cst_21 : f32 to vector<64x1xf32>
    %51 = arith.cmpf oeq, %49, %50 : vector<64x1xf32>
    %cst_22 = arith.constant 0.000000e+00 : f32
    %52 = vector.broadcast %cst_22 : f32 to vector<64x1xf32>
    %53 = arith.select %51, %52, %48 : vector<64x1xi1>, vector<64x1xf32>
    %c0_23 = arith.constant 0 : index
    %c0_24 = arith.constant 0 : index
    %54 = vector.load %arg4[%c0_23, %c0_24] : memref<32x32xf32, #tpu.memory_space<vmem>>, vector<32x32xf32>
    %cst_25 = arith.constant dense<0.000000e+00> : vector<64x32xf32>
    %55 = tpu.matmul %45, %54, %cst_25 {dimension_numbers = #tpu.dot_dimension_numbers<[1], [0], [0], [1], [0, 0, 1, 1], [], []>} : vector<64x32xf32>, vector<32x32xf32>, vector<64x32xf32> -> vector<64x32xf32>
    %56 = vector.broadcast %53 : vector<64x1xf32> to vector<64x32xf32>
    %57 = arith.mulf %56, %55 : vector<64x32xf32>
    %58 = vector.extract_strided_slice %39 {offsets = [0, 0], sizes = [16, 16], strides = [1, 1]} : vector<64x16xf32> to vector<16x16xf32>
    %59 = vector.extract_strided_slice %57 {offsets = [0, 0], sizes = [16, 32], strides = [1, 1]} : vector<64x32xf32> to vector<16x32xf32>
    %cst_26 = arith.constant dense<0.000000e+00> : vector<16x32xf32>
    %60 = tpu.matmul %58, %59, %cst_26 {dimension_numbers = #tpu.dot_dimension_numbers<[1], [0], [0], [1], [0, 0, 1, 1], [], []>} : vector<16x16xf32>, vector<16x32xf32>, vector<16x32xf32> -> vector<16x32xf32>
    %61 = vector.extract_strided_slice %39 {offsets = [16, 0], sizes = [16, 16], strides = [1, 1]} : vector<64x16xf32> to vector<16x16xf32>
    %62 = vector.extract_strided_slice %57 {offsets = [16, 0], sizes = [16, 32], strides = [1, 1]} : vector<64x32xf32> to vector<16x32xf32>
    %cst_27 = arith.constant dense<0.000000e+00> : vector<16x32xf32>
    %63 = tpu.matmul %61, %62, %cst_27 {dimension_numbers = #tpu.dot_dimension_numbers<[1], [0], [0], [1], [0, 0, 1, 1], [], []>} : vector<16x16xf32>, vector<16x32xf32>, vector<16x32xf32> -> vector<16x32xf32>
    %64 = vector.extract_strided_slice %39 {offsets = [32, 0], sizes = [16, 16], strides = [1, 1]} : vector<64x16xf32> to vector<16x16xf32>
    %65 = vector.extract_strided_slice %57 {offsets = [32, 0], sizes = [16, 32], strides = [1, 1]} : vector<64x32xf32> to vector<16x32xf32>
    %cst_28 = arith.constant dense<0.000000e+00> : vector<16x32xf32>
    %66 = tpu.matmul %64, %65, %cst_28 {dimension_numbers = #tpu.dot_dimension_numbers<[1], [0], [0], [1], [0, 0, 1, 1], [], []>} : vector<16x16xf32>, vector<16x32xf32>, vector<16x32xf32> -> vector<16x32xf32>
    %67 = vector.extract_strided_slice %39 {offsets = [48, 0], sizes = [16, 16], strides = [1, 1]} : vector<64x16xf32> to vector<16x16xf32>
    %68 = vector.extract_strided_slice %57 {offsets = [48, 0], sizes = [16, 32], strides = [1, 1]} : vector<64x32xf32> to vector<16x32xf32>
    %cst_29 = arith.constant dense<0.000000e+00> : vector<16x32xf32>
    %69 = tpu.matmul %67, %68, %cst_29 {dimension_numbers = #tpu.dot_dimension_numbers<[1], [0], [0], [1], [0, 0, 1, 1], [], []>} : vector<16x16xf32>, vector<16x32xf32>, vector<16x32xf32> -> vector<16x32xf32>
    %70 = tpu.concatenate %60, %63, %66, %69 in 0 : vector<16x32xf32>, vector<16x32xf32>, vector<16x32xf32>, vector<16x32xf32> -> vector<64x32xf32>
    %71 = vector.broadcast %53 : vector<64x1xf32> to vector<64x32xf32>
    %72 = arith.mulf %71, %70 : vector<64x32xf32>
    %cst_30 = arith.constant 0.00999999977 : f32
    %73 = vector.broadcast %cst_30 : f32 to vector<64x32xf32>
    %74 = arith.mulf %73, %72 : vector<64x32xf32>
    %75 = arith.maximumf %72, %74 : vector<64x32xf32>
    %c0_31 = arith.constant 0 : index
    %c0_32 = arith.constant 0 : index
    %76 = vector.load %arg5[%c0_31, %c0_32] : memref<32x128xf32, #tpu.memory_space<vmem>>, vector<32x128xf32>
    %cst_33 = arith.constant dense<0.000000e+00> : vector<64x128xf32>
    %77 = tpu.matmul %75, %76, %cst_33 {dimension_numbers = #tpu.dot_dimension_numbers<[1], [0], [0], [1], [0, 0, 1, 1], [], []>} : vector<64x32xf32>, vector<32x128xf32>, vector<64x128xf32> -> vector<64x128xf32>
    %78 = vector.broadcast %53 : vector<64x1xf32> to vector<64x128xf32>
    %79 = arith.mulf %78, %77 : vector<64x128xf32>
    %80 = vector.extract_strided_slice %39 {offsets = [0, 0], sizes = [16, 16], strides = [1, 1]} : vector<64x16xf32> to vector<16x16xf32>
    %81 = vector.extract_strided_slice %79 {offsets = [0, 0], sizes = [16, 128], strides = [1, 1]} : vector<64x128xf32> to vector<16x128xf32>
    %cst_34 = arith.constant dense<0.000000e+00> : vector<16x128xf32>
    %82 = tpu.matmul %80, %81, %cst_34 {dimension_numbers = #tpu.dot_dimension_numbers<[1], [0], [0], [1], [0, 0, 1, 1], [], []>} : vector<16x16xf32>, vector<16x128xf32>, vector<16x128xf32> -> vector<16x128xf32>
    %83 = vector.extract_strided_slice %39 {offsets = [16, 0], sizes = [16, 16], strides = [1, 1]} : vector<64x16xf32> to vector<16x16xf32>
    %84 = vector.extract_strided_slice %79 {offsets = [16, 0], sizes = [16, 128], strides = [1, 1]} : vector<64x128xf32> to vector<16x128xf32>
    %cst_35 = arith.constant dense<0.000000e+00> : vector<16x128xf32>
    %85 = tpu.matmul %83, %84, %cst_35 {dimension_numbers = #tpu.dot_dimension_numbers<[1], [0], [0], [1], [0, 0, 1, 1], [], []>} : vector<16x16xf32>, vector<16x128xf32>, vector<16x128xf32> -> vector<16x128xf32>
    %86 = vector.extract_strided_slice %39 {offsets = [32, 0], sizes = [16, 16], strides = [1, 1]} : vector<64x16xf32> to vector<16x16xf32>
    %87 = vector.extract_strided_slice %79 {offsets = [32, 0], sizes = [16, 128], strides = [1, 1]} : vector<64x128xf32> to vector<16x128xf32>
    %cst_36 = arith.constant dense<0.000000e+00> : vector<16x128xf32>
    %88 = tpu.matmul %86, %87, %cst_36 {dimension_numbers = #tpu.dot_dimension_numbers<[1], [0], [0], [1], [0, 0, 1, 1], [], []>} : vector<16x16xf32>, vector<16x128xf32>, vector<16x128xf32> -> vector<16x128xf32>
    %89 = vector.extract_strided_slice %39 {offsets = [48, 0], sizes = [16, 16], strides = [1, 1]} : vector<64x16xf32> to vector<16x16xf32>
    %90 = vector.extract_strided_slice %79 {offsets = [48, 0], sizes = [16, 128], strides = [1, 1]} : vector<64x128xf32> to vector<16x128xf32>
    %cst_37 = arith.constant dense<0.000000e+00> : vector<16x128xf32>
    %91 = tpu.matmul %89, %90, %cst_37 {dimension_numbers = #tpu.dot_dimension_numbers<[1], [0], [0], [1], [0, 0, 1, 1], [], []>} : vector<16x16xf32>, vector<16x128xf32>, vector<16x128xf32> -> vector<16x128xf32>
    %92 = tpu.concatenate %82, %85, %88, %91 in 0 : vector<16x128xf32>, vector<16x128xf32>, vector<16x128xf32>, vector<16x128xf32> -> vector<64x128xf32>
    %93 = vector.broadcast %53 : vector<64x1xf32> to vector<64x128xf32>
    %94 = arith.mulf %93, %92 : vector<64x128xf32>
    %cst_38 = arith.constant 0.00999999977 : f32
    %95 = vector.broadcast %cst_38 : f32 to vector<64x128xf32>
    %96 = arith.mulf %95, %94 : vector<64x128xf32>
    %97 = arith.maximumf %94, %96 : vector<64x128xf32>
    %98 = tpu.iota {dimensions = array<i32: 1>} : vector<64x128xi32>
    %c8_i32 = arith.constant 8 : i32
    %99 = vector.broadcast %c8_i32 : i32 to vector<64x128xi32>
    %100 = arith.cmpi slt, %98, %99 : vector<64x128xi32>
    %cst_39 = arith.constant -1.000000e+30 : f32
    %101 = vector.broadcast %cst_39 : f32 to vector<64x128xf32>
    %102 = arith.select %100, %97, %101 : vector<64x128xi1>, vector<64x128xf32>
    %cst_40 = arith.constant dense<0xFF800000> : vector<64xf32>
    %103 = vector.multi_reduction <maximumf>, %102, %cst_40 [1] : vector<64x128xf32> to vector<64xf32>
    %104 = vector.shape_cast %103 : vector<64xf32> to vector<64x1xf32>
    %105 = vector.broadcast %104 : vector<64x1xf32> to vector<64x128xf32>
    %106 = arith.subf %102, %105 : vector<64x128xf32>
    %107 = math.exp %106 : vector<64x128xf32>
    %cst_41 = arith.constant dense<0.000000e+00> : vector<64xf32>
    %108 = vector.multi_reduction <add>, %107, %cst_41 [1] : vector<64x128xf32> to vector<64xf32>
    %109 = vector.shape_cast %108 : vector<64xf32> to vector<64x1xf32>
    %110 = vector.broadcast %109 : vector<64x1xf32> to vector<64x128xf32>
    %111 = arith.divf %107, %110 : vector<64x128xf32>
    %c0_42 = arith.constant 0 : index
    %c0_43 = arith.constant 0 : index
    %112 = vector.load %arg6[%c0_42, %c0_43] : memref<64x128xf32, #tpu.memory_space<vmem>>, vector<64x128xf32>
    tpu.vector_store %arg6[%c0_42, %c0_43], %111 {strides = array<i32>} : memref<64x128xf32, #tpu.memory_space<vmem>>, vector<64x128xf32>,
    return
  }
  func.func @transform_0(%arg0: i32, %arg1: memref<8xf32, #tpu.memory_space<smem>>) -> (i32, i32, i32) {
    %c0_i32 = arith.constant 0 : i32
    %c0_i32_0 = arith.constant 0 : i32
    %c0_i32_1 = arith.constant 0 : i32
    return %arg0, %c0_i32, %c0_i32_0 : i32, i32, i32
  }
  func.func @transform_1(%arg0: i32, %arg1: memref<8xf32, #tpu.memory_space<smem>>) -> (i32, i32, i32) {
    %c0_i32 = arith.constant 0 : i32
    %c0_i32_0 = arith.constant 0 : i32
    %c0_i32_1 = arith.constant 0 : i32
    return %arg0, %c0_i32, %c0_i32_0 : i32, i32, i32
  }
  func.func @transform_2(%arg0: i32, %arg1: memref<8xf32, #tpu.memory_space<smem>>) -> (i32, i32) {
    %c0_i32 = arith.constant 0 : i32
    %c0_i32_0 = arith.constant 0 : i32
    %c0_i32_1 = arith.constant 0 : i32
    return %c0_i32, %c0_i32_0 : i32, i32
  }
  func.func @transform_3(%arg0: i32, %arg1: memref<8xf32, #tpu.memory_space<smem>>) -> (i32, i32) {
    %c0_i32 = arith.constant 0 : i32
    %c0_i32_0 = arith.constant 0 : i32
    %c0_i32_1 = arith.constant 0 : i32
    return %c0_i32, %c0_i32_0 : i32, i32
  }
  func.func @transform_4(%arg0: i32, %arg1: memref<8xf32, #tpu.memory_space<smem>>) -> (i32, i32) {
    %c0_i32 = arith.constant 0 : i32
    %c0_i32_0 = arith.constant 0 : i32
    return %arg0, %c0_i32 : i32, i32
  }
}

</mosaic_0001>

<bundles_post_ra>
// kernel: tpu_custom_call.1
= control target key start
LH: loop header
LB: loop body
LE: loop exit
PB: predicated region body
PF: predicated region fallthrough
CT: control target
= control target key end

     0   :  { %s1103_s21 = smov [#allocation3]   ;;  %s1670_s0 = inlined_call_operand.vmem [shape: f32[8], index: 0, kind: input, shape index: {}]   ;;  %s1671_s1 = inlined_call_operand.vmem [shape: f32[1,256,16], index: 1, kind: input, shape index: {}]   ;;  %s1672_s2 = inlined_call_operand.vmem [shape: f32[1,256,32], index: 2, kind: input, shape index: {}]   ;;  %s1673_s3 = inlined_call_operand.vmem [shape: f32[32,32], index: 3, kind: input, shape index: {}]   ;;  %s1674_s4 = inlined_call_operand.vmem [shape: f32[32,128], index: 4, kind: input, shape index: {}]   ;;  %s1675_s5 = inlined_call_operand.hbm [shape: f32[64,128], index: 5, kind: output, shape index: {}]  }
   0x1   :  { %s11_s20 = sshll.u32 %s1670_s0, 4  ;;  %s12_s20 = int_to_ptr.vmem [resolvable:$true] %s11_s20 }
   0x2   :  { %14 = dma.vmem_to_smem %s12_s20, 16, %s1103_s21, [#allocation2] }
   0x3   :  { %1099 = dma.done.wait [#allocation2], 16 }
   0x4   :  { %1100 = vsyncadd [#allocation2], 4294967280 }
   0x5   :  { %17 = sfence }
   0x6   :  { %v351_v0 = vld [vmem:[%s1673_s3 + $0x18] sm:$0xff]  ;;  %v350_v1 = vld [vmem:[%s1673_s3 + $0x10] sm:$0xff]  ;;  %s972_s26 = sld [smem:[#allocation3 + $0x4]]  ;;  %v349_v2 = vld [vmem:[%s1673_s3 + $0x8] sm:$0xff]  ;;  %vm352_vm0 = vcmask 261120   ;;  %vm219_vm1 = vcmask 130048  }
   0x7   :  { %389 = vmatpush.msra.mxu0 %v351_v0  ;;  %s974_s27 = sld [smem:[#allocation3 + $0x5]]  ;;  %v348_v3 = vld [vmem:[%s1673_s3] sm:$0xff]  ;;  %v46_v6 = vld [vmem:[%s1672_s2 + $0x8] sm:$0xff]  ;;  %v30_v17 = vld [vmem:[%s1671_s1 + $0x18] sm:$0xff] }
   0x8   :  { %s976_s0 = sld [smem:[#allocation3 + $0x6]]  ;;  %v45_v4 = vld [vmem:[%s1672_s2] sm:$0xff]  ;;  %v90_v7 = vld [vmem:[%s1672_s2 + $0x48] sm:$0xff]  ;;  %v66_v23 = vld [vmem:[%s1671_s1 + $0x58] sm:$0xff] }
   0x9   :  { %390 = vmatpush.msra.mxu0 %v350_v1  ;;  %s978_s30 = sld [smem:[#allocation3 + $0x7]]  ;;  %v89_v5 = vld [vmem:[%s1672_s2 + $0x40] sm:$0xff]  ;;  %v142_v10 = vld [vmem:[%s1672_s2 + $0x88] sm:$0xff]  ;;  %v118_v29 = vld [vmem:[%s1671_s1 + $0x98] sm:$0xff] }
   0xa   :  { %s1155_s10 = sld [smem:[#allocation3]]  ;;  %v141_v9 = vld [vmem:[%s1672_s2 + $0x80] sm:$0xff]  ;;  %v28_v18 = vld [vmem:[%s1671_s1 + $0x8] sm:$0xff]  ;;  %v170_v34 = vld [vmem:[%s1671_s1 + $0xd8] sm:$0xff] }
   0xb   :  { %391 = vmatpush.msra.mxu0 %v349_v2  ;;  %s1160_s13 = sld [smem:[#allocation3 + $0x1]]  ;;  %v193_v13 = vld [vmem:[%s1672_s2 + $0xc0] sm:$0xff]  ;;  %v194_v20 = vld [vmem:[%s1672_s2 + $0xc8] sm:$0xff]  ;;  %v29_v54 = vld [vmem:[%s1671_s1 + $0x10] sm:$0xff] }
   0xc   :  { %v1168_v8 = vstv %s972_s26  ;;  %s1173_s19 = sld [smem:[#allocation3 + $0x2]]  ;;  %v64_v24 = vld [vmem:[%s1671_s1 + $0x48] sm:$0xff]  ;;  %v65_v55 = vld [vmem:[%s1671_s1 + $0x50] sm:$0xff]  ;;  %v27_v62 = vld [vmem:[%s1671_s1] sm:$0xff] }
   0xd   :  { %392 = vmatpush.msra.mxu0 %v348_v3  ;;  %v55_v11 = vmul.f32 %v1168_v8, %v45_v4  ;;  %v1179_v12 = vstv %s974_s27  ;;  %s1184_s24 = sld [smem:[#allocation3 + $0x3]]  ;;  %v56_v14 = vmul.f32 %v1168_v8, %v46_v6  ;;  %v116_v30 = vld [vmem:[%s1671_s1 + $0x88] sm:$0xff]  ;;  %v117_v56 = vld [vmem:[%s1671_s1 + $0x90] sm:$0xff]  ;;  %v63_v3 = vld [vmem:[%s1671_s1 + $0x40] sm:$0xff] }
   0xe   :  { %v99_v15 = vmul.f32 %v1179_v12, %v89_v5  ;;  %v1188_v16 = vstv %s976_s0  ;;  %v100_v19 = vmul.f32 %v1179_v12, %v90_v7  ;;  %v168_v41 = vld [vmem:[%s1671_s1 + $0xc8] sm:$0xff]  ;;  %v169_v61 = vld [vmem:[%s1671_s1 + $0xd0] sm:$0xff]  ;;  %v115_v4 = vld [vmem:[%s1671_s1 + $0x80] sm:$0xff] }
   0xf   :  { %v151_v21 = vmul.f32 %v1188_v16, %v141_v9  ;;  %v1201_v22 = vstv %s978_s30  ;;  %v152_v25 = vmul.f32 %v1188_v16, %v142_v10  ;;  %v32_v42 = vld [vmem:[%s1671_s1 + $0x28] sm:$0xff]  ;;  %v167_v10 = vld [vmem:[%s1671_s1 + $0xc0] sm:$0xff] }
  0x10   :  { %v107_v26 = vadd.f32 %v99_v15, %v55_v11  ;;  %v203_v27 = vmul.f32 %v1201_v22, %v193_v13  ;;  %v1212_v28 = vstv %s1155_s10  ;;  %v108_v31 = vadd.f32 %v100_v19, %v56_v14  ;;  %v68_v43 = vld [vmem:[%s1671_s1 + $0x68] sm:$0xff]  ;;  %v47_v11 = vld [vmem:[%s1672_s2 + $0x10] sm:$0xff] }
  0x11   :  { %v40_v32 = vmul.f32 %v1212_v28, %v30_v17  ;;  %v1222_v33 = vstv %s1160_s13  ;;  %v38_v35 = vmul.f32 %v1212_v28, %v28_v18  ;;  %v204_v36 = vmul.f32 %v1201_v22, %v194_v20  ;;  %v120_v48 = vld [vmem:[%s1671_s1 + $0xa8] sm:$0xff] }
  0x12   :  { %v159_v37 = vadd.f32 %v151_v21, %v107_v26  ;;  %v76_v38 = vmul.f32 %v1222_v33, %v66_v23  ;;  %v1231_v39 = vstv %s1173_s19  ;;  %v74_v40 = vmul.f32 %v1222_v33, %v64_v24  ;;  %v172_v49 = vld [vmem:[%s1671_s1 + $0xe8] sm:$0xff]  ;;  %v91_v23 = vld [vmem:[%s1672_s2 + $0x50] sm:$0xff] }
  0x13   :  { %v128_v44 = vmul.f32 %v1231_v39, %v118_v29  ;;  %v1245_v45 = vstv %s1184_s24  ;;  %v126_v46 = vmul.f32 %v1231_v39, %v116_v30  ;;  %v160_v47 = vadd.f32 %v152_v25, %v108_v31  ;;  %v143_v24 = vld [vmem:[%s1672_s2 + $0x90] sm:$0xff]  ;;  %v31_v25 = vld [vmem:[%s1671_s1 + $0x20] sm:$0xff] }
  0x14   :  { %v211_v50 = vadd.f32 %v203_v27, %v159_v37  ;;  %v84_v51 = vadd.f32 %v76_v38, %v40_v32  ;;  %v180_v52 = vmul.f32 %v1245_v45, %v170_v34  ;;  %v82_v53 = vadd.f32 %v74_v40, %v38_v35  ;;  %v67_v31 = vld [vmem:[%s1671_s1 + $0x60] sm:$0xff] }
  0x15   :  { %v178_v57 = vmul.f32 %v1245_v45, %v168_v41  ;;  %v212_v58 = vadd.f32 %v204_v36, %v160_v47  ;;  %v42_v59 = vmul.f32 %v1212_v28, %v32_v42  ;;  %v78_v60 = vmul.f32 %v1222_v33, %v68_v43 }
  0x16   :  { %979 = vmatmul.msk.f32.vlgmr.msra.gmra.mxu0 %vm352_vm0, %v211_v50  ;;  %v136_v63 = vadd.f32 %v128_v44, %v84_v51  ;;  %v134_v0 = vadd.f32 %v126_v46, %v82_v53  ;;  %v130_v1 = vmul.f32 %v1231_v39, %v120_v48  ;;  %v182_v2 = vmul.f32 %v1245_v45, %v172_v49 }
  0x17   :  { %v86_v5 = vadd.f32 %v78_v60, %v42_v59  ;;  %v39_v6 = vmul.f32 %v1212_v28, %v29_v54  ;;  %v75_v7 = vmul.f32 %v1222_v33, %v65_v55  ;;  %v127_v9 = vmul.f32 %v1231_v39, %v117_v56 }
  0x18   :  { %v1291_v13 = vadd.f32 %v180_v52, %v136_v63  ;;  %v1293_v14 = vadd.f32 %v178_v57, %v134_v0  ;;  %v179_v15 = vmul.f32 %v1245_v45, %v169_v61  ;;  %v37_v17 = vmul.f32 %v1212_v28, %v27_v62 }
  0x19   :  { %v138_v18 = vadd.f32 %v130_v1, %v86_v5  ;;  %v83_v19 = vadd.f32 %v75_v7, %v39_v6  ;;  %v73_v20 = vmul.f32 %v1222_v33, %v63_v3  ;;  %v125_v21 = vmul.f32 %v1231_v39, %v115_v4 }
  0x1a   :  { %v229_v26 = vsel %vm219_vm1, %v1291_v13, 0.0  ;;  %v223_v27 = vsel %vm219_vm1, %v1293_v14, 0.0  ;;  %v177_v29 = vmul.f32 %v1245_v45, %v167_v10  ;;  %v57_v30 = vmul.f32 %v1168_v8, %v47_v11 }
  0x1b   :  { %18 = vsyncpa [#allocation5], 0  ;;  %230 = vadd.xlane.f32.xlu1 %v229_v26  ;;  %224 = vadd.xlane.f32.xlu0 %v223_v27  ;;  %v1317_v32 = vadd.f32 %v182_v2, %v138_v18  ;;  %v135_v34 = vadd.f32 %v127_v9, %v83_v19  ;;  %v81_v35 = vadd.f32 %v73_v20, %v37_v17  ;;  %v195_v36 = vld [vmem:[%s1672_s2 + $0xd0] sm:$0xff]  ;;  %v119_v37 = vld [vmem:[%s1671_s1 + $0xa0] sm:$0xff]  ;;  %s960_s15 = sshll.u32 %s1675_s5, 4  ;;  %s1105_s16 = smov 128   ;;  %s961_s15 = int_to_ptr.hbm [resolvable:$true] %s960_s15 }
  0x1c   :  { %v101_v38 = vmul.f32 %v1179_v12, %v91_v23  ;;  %v153_v40 = vmul.f32 %v1188_v16, %v143_v24  ;;  %v41_v41 = vmul.f32 %v1212_v28, %v31_v25  ;;  %v171_v42 = vld [vmem:[%s1671_s1 + $0xe0] sm:$0xff]  ;;  %v48_v43 = vld [vmem:[%s1672_s2 + $0x18] sm:$0xff]  ;;  %v77_v48 = vmul.f32 %v1222_v33, %v67_v31  ;;  %v33_v9 = vld [vmem:[%s1671_s1 + $0x30] sm:$0xff]  ;;  %s1106_s10 = smov 8  }
  0x1d   :  { %v235_v44 = vsel %vm219_vm1, %v1317_v32, 0.0  ;;  %v1336_v46 = vadd.f32 %v179_v15, %v135_v34  ;;  %v133_v47 = vadd.f32 %v125_v21, %v81_v35  ;;  %v92_v49 = vld [vmem:[%s1672_s2 + $0x58] sm:$0xff]  ;;  %v205_v51 = vmul.f32 %v1201_v22, %v195_v36  ;;  %v49_v62 = vld [vmem:[%s1672_s2 + $0x20] sm:$0xff]  ;;  %v69_v10 = vld [vmem:[%s1671_s1 + $0x70] sm:$0xff] }
  0x1e   :  { %980 = vmatmul.msk.f32.gmra.mxu0 %vm352_vm0, %v212_v58  ;;  %236 = vadd.xlane.f32.xlu2 %v235_v44  ;;  %v109_v50 = vadd.f32 %v101_v38, %v57_v30  ;;  %v129_v52 = vmul.f32 %v1231_v39, %v119_v37  ;;  %v144_v53 = vld [vmem:[%s1672_s2 + $0x98] sm:$0xff]  ;;  %v85_v55 = vadd.f32 %v77_v48, %v41_v41  ;;  %v93_v3 = vld [vmem:[%s1672_s2 + $0x60] sm:$0xff]  ;;  %v121_v19 = vld [vmem:[%s1671_s1 + $0xb0] sm:$0xff] }
  0x1f   :  { %v1348_v54 = vadd.f32 %v177_v29, %v133_v47  ;;  %v181_v56 = vmul.f32 %v1245_v45, %v171_v42  ;;  %v58_v57 = vmul.f32 %v1168_v8, %v48_v43  ;;  %v226_v58 = vsel %vm219_vm1, %v1336_v46, 0.0  ;;  %v196_v61 = vld [vmem:[%s1672_s2 + $0xd8] sm:$0xff]  ;;  %v173_v25 = vld [vmem:[%s1671_s1 + $0xf0] sm:$0xff]  ;;  %v145_v36 = vld [vmem:[%s1672_s2 + $0xa0] sm:$0xff] }
  0x20   :  { %v161_v59 = vadd.f32 %v153_v40, %v109_v50  ;;  %v102_v60 = vmul.f32 %v1179_v12, %v92_v49  ;;  %v34_v63 = vld [vmem:[%s1671_s1 + $0x38] sm:$0xff]  ;;  %v137_v1 = vadd.f32 %v129_v52, %v85_v55  ;;  %v154_v2 = vmul.f32 %v1188_v16, %v144_v53  ;;  %v197_v43 = vld [vmem:[%s1672_s2 + $0xe0] sm:$0xff]  ;;  %v50_v47 = vld [vmem:[%s1672_s2 + $0x28] sm:$0xff] }
  0x21   :  { %v220_v0 = vsel %vm219_vm1, %v1348_v54, 0.0  ;;  %v70_v4 = vld [vmem:[%s1671_s1 + $0x78] sm:$0xff]  ;;  %v206_v15 = vmul.f32 %v1201_v22, %v196_v61  ;;  %v44_v17 = vmul.f32 %v1212_v28, %v34_v63  ;;  %v59_v20 = vmul.f32 %v1168_v8, %v49_v62  ;;  %v146_v55 = vld [vmem:[%s1672_s2 + $0xa8] sm:$0xff]  ;;  %v95_v61 = vld [vmem:[%s1672_s2 + $0x70] sm:$0xff] }
  0x22   :  { %v122_v5 = vld [vmem:[%s1671_s1 + $0xb8] sm:$0xff]  ;;  %v213_v6 = vadd.f32 %v205_v51, %v161_v59  ;;  %v110_v7 = vadd.f32 %v102_v60, %v58_v57  ;;  %v1382_v11 = vadd.f32 %v181_v56, %v137_v1  ;;  %v103_v21 = vmul.f32 %v1179_v12, %v93_v3  ;;  %v198_v59 = vld [vmem:[%s1672_s2 + $0xe8] sm:$0xff]  ;;  %v51_v60 = vld [vmem:[%s1672_s2 + $0x30] sm:$0xff] }
  0x23   :  { %227 = vadd.xlane.f32.xlu1 %v226_v58  ;;  %221 = vadd.xlane.f32.xlu0 %v220_v0  ;;  %v174_v18 = vld [vmem:[%s1671_s1 + $0xf8] sm:$0xff]  ;;  %v80_v23 = vmul.f32 %v1222_v33, %v70_v4  ;;  %v132_v24 = vmul.f32 %v1231_v39, %v122_v5  ;;  %v43_v29 = vmul.f32 %v1212_v28, %v33_v9 }
  0x24   :  { %v232_v26 = vsel %vm219_vm1, %v1382_v11, 0.0  ;;  %v162_v27 = vadd.f32 %v154_v2, %v110_v7  ;;  %v79_v30 = vmul.f32 %v1222_v33, %v69_v10  ;;  %v184_v34 = vmul.f32 %v1245_v45, %v174_v18  ;;  %v147_v2 = vld [vmem:[%s1672_s2 + $0xb0] sm:$0xff]  ;;  %v52_v7 = vld [vmem:[%s1672_s2 + $0x38] sm:$0xff] }
  0x25   :  { %v88_v31 = vadd.f32 %v80_v23, %v44_v17  ;;  %v131_v35 = vmul.f32 %v1231_v39, %v121_v19  ;;  %v183_v38 = vmul.f32 %v1245_v45, %v173_v25  ;;  %v111_v42 = vadd.f32 %v103_v21, %v59_v20  ;;  %v94_v45 = vld [vmem:[%s1672_s2 + $0x68] sm:$0xff]  ;;  %v96_v9 = vld [vmem:[%s1672_s2 + $0x78] sm:$0xff] }
  0x26   :  { %981 = vmatmul.msk.f32.gmra.mxu0 %vm352_vm0, %v213_v6  ;;  %233 = vadd.xlane.f32.xlu2 %v232_v26  ;;  %v87_v37 = vadd.f32 %v79_v30, %v43_v29  ;;  %v214_v28 = vadd.f32 %v206_v15, %v162_v27  ;;  %v155_v33 = vmul.f32 %v1188_v16, %v145_v36  ;;  %v199_v6 = vld [vmem:[%s1672_s2 + $0xf0] sm:$0xff]  ;;  %v148_v19 = vld [vmem:[%s1672_s2 + $0xb8] sm:$0xff] }
  0x27   :  { %v140_v40 = vadd.f32 %v132_v24, %v88_v31  ;;  %v207_v49 = vmul.f32 %v1201_v22, %v197_v43  ;;  %v60_v52 = vmul.f32 %v1168_v8, %v50_v47  ;;  %v104_v53 = vmul.f32 %v1179_v12, %v94_v45  ;;  %v200_v24 = vld [vmem:[%s1672_s2 + $0xf8] sm:$0xff] }
  0x28   :  { %v139_v41 = vadd.f32 %v131_v35, %v87_v37  ;;  %v163_v51 = vadd.f32 %v155_v33, %v111_v42  ;;  %v156_v58 = vmul.f32 %v1188_v16, %v146_v55  ;;  %v208_v63 = vmul.f32 %v1201_v22, %v198_v59 }
  0x29   :  { %v1414_v44 = vadd.f32 %v184_v34, %v140_v40  ;;  %v112_v57 = vadd.f32 %v104_v53, %v60_v52  ;;  %v61_v0 = vmul.f32 %v1168_v8, %v51_v60  ;;  %v105_v1 = vmul.f32 %v1179_v12, %v95_v61 }
  0x2a   :  { %v1416_v39 = vadd.f32 %v183_v38, %v139_v41  ;;  %v215_v56 = vadd.f32 %v207_v49, %v163_v51  ;;  %v157_v5 = vmul.f32 %v1188_v16, %v147_v2  ;;  %v209_v15 = vmul.f32 %v1201_v22, %v199_v6 }
  0x2b   :  { %v241_v48 = vsel %vm219_vm1, %v1414_v44, 0.0  ;;  %v164_v62 = vadd.f32 %v156_v58, %v112_v57  ;;  %v113_v4 = vadd.f32 %v105_v1, %v61_v0  ;;  %v62_v17 = vmul.f32 %v1168_v8, %v52_v7 }
  0x2c   :  { %242 = vadd.xlane.f32.xlu0 %v241_v48  ;;  %v238_v50 = vsel %vm219_vm1, %v1416_v39, 0.0  ;;  %v106_v18 = vmul.f32 %v1179_v12, %v96_v9  ;;  %v158_v23 = vmul.f32 %v1188_v16, %v148_v19  ;;  %v210_v26 = vmul.f32 %v1201_v22, %v200_v24 }
  0x2d   :  { %239 = vadd.xlane.f32.xlu1 %v238_v50  ;;  %v216_v3 = vadd.f32 %v208_v63, %v164_v62  ;;  %v165_v10 = vadd.f32 %v157_v5, %v113_v4 }
  0x2e   :  { %982 = vmatmul.msk.f32.gmra.mxu0 %vm352_vm0, %v214_v28  ;;  %v114_v21 = vadd.f32 %v106_v18, %v62_v17 }
  0x2f   :  { %v217_v20 = vadd.f32 %v209_v15, %v165_v10 }
  0x30   :  { %v166_v25 = vadd.f32 %v158_v23, %v114_v21 }
  0x32   :  { %v218_v8 = vadd.f32 %v210_v26, %v166_v25 }
  0x36   :  { %983 = vmatmul.msk.f32.gmra.mxu0 %vm352_vm0, %v215_v56 }
  0x3e   :  { %984 = vmatmul.msk.f32.gmra.mxu0 %vm352_vm0, %v216_v3 }
  0x46   :  { %985 = vmatmul.msk.f32.gmra.mxu0 %vm352_vm0, %v217_v20 }
  0x4e   :  { %986 = vmatmul.msk.f32.gmra.mxu0 %vm352_vm0, %v218_v8 }
  0x8e   :  { %v231_v12 = vpop.xlane.xlu1 %230  ;;  %v225_v27 = vpop.xlane.xlu0 %224 }
  0x8f   :  { %1015 = vrsqrt.f32 %v231_v12  ;;  %vm280_vm2 = vweird.f32 %v231_v12  ;;  %vm260_vm6 = vweird.f32 %v225_v27 }
  0x90   :  { %1017 = vrsqrt.f32 %v225_v27 }
  0x91   :  { %v1476_v29 = vpop.xlane.xlu2 %236 }
  0x92   :  { %1019 = vrsqrt.f32 %v1476_v29 }
  0x93   :  { %v1479_v16 = vpop.f32.mrf.mxu0 }
  0x95   :  { %v1016_v30 = vpop.eup %1015 }
  0x96   :  { %v1018_v31 = vpop.eup %1017  ;;  %v275_v34 = vmul.f32 %v1016_v30, %v231_v12  ;;  %v228_v35 = vpop.xlane.xlu1 %227  ;;  %vm281_vm3 = vweird.f32 %v1016_v30 }
  0x97   :  { %v222_v36 = vpop.xlane.xlu0 %221  ;;  %v255_v37 = vmul.f32 %v1018_v31, %v225_v27  ;;  %1021 = vrsqrt.f32 %v228_v35  ;;  %vm261_vm4 = vweird.f32 %v1018_v31  ;;  %vm282_vm5 = vmor %vm280_vm2, %vm281_vm3  ;;  %vm270_vm8 = vweird.f32 %v228_v35 }
  0x98   :  { %v1481_v22 = vpop.eup %1019  ;;  %v276_v38 = vmul.f32 %v1016_v30, %v275_v34  ;;  %1023 = vrsqrt.f32 %v222_v36  ;;  %vm262_vm7 = vmor %vm260_vm6, %vm261_vm4  ;;  %vm250_vm13 = vweird.f32 %v222_v36  ;;  %vm300_vm2 = vweird.f32 %v1476_v29 }
  0x99   :  { %v256_v40 = vmul.f32 %v1018_v31, %v255_v37  ;;  %v1483_v41 = vpop.xlane.xlu2 %233  ;;  %v295_v42 = vmul.f32 %v1481_v22, %v1476_v29  ;;  %vm301_vm3 = vweird.f32 %v1481_v22 }
  0x9a   :  { %v277_v28 = vmul.f32 0.5, %v276_v38  ;;  %1025 = vrsqrt.f32 %v1483_v41  ;;  %vm290_vm4 = vweird.f32 %v1483_v41 }
  0x9b   :  { %v257_v33 = vmul.f32 0.5, %v256_v40  ;;  %v397_v43 = vpop.f32.mrf.mxu0  ;;  %v296_v51 = vmul.f32 %v1481_v22, %v295_v42 }
  0x9c   :  { %v278_v47 = vsub.f32 1.5, %v277_v28 }
  0x9d   :  { %v1022_v45 = vpop.eup %1021  ;;  %v258_v48 = vsub.f32 1.5, %v257_v33  ;;  %v297_v63 = vmul.f32 0.5, %v296_v51 }
  0x9e   :  { %v1024_v49 = vpop.eup %1023  ;;  %v279_v50 = vmul.f32 %v1016_v30, %v278_v47  ;;  %v265_v52 = vmul.f32 %v1022_v45, %v228_v35  ;;  %vm271_vm9 = vweird.f32 %v1022_v45 }
  0x9f   :  { %v259_v53 = vmul.f32 %v1018_v31, %v258_v48  ;;  %v245_v55 = vmul.f32 %v1024_v49, %v222_v36  ;;  %v1491_v58 = vpop.xlane.xlu0 %242  ;;  %vm251_vm10 = vweird.f32 %v1024_v49  ;;  %vm272_vm12 = vmor %vm270_vm8, %vm271_vm9  ;;  %v298_v20 = vsub.f32 1.5, %v297_v63 }
  0xa0   :  { %v1489_v56 = vpop.eup %1025  ;;  %v266_v57 = vmul.f32 %v1022_v45, %v265_v52  ;;  %v283_v61 = vsel %vm282_vm5, %v1016_v30, %v279_v50  ;;  %v1495_v62 = vpop.xlane.xlu1 %239  ;;  %1027 = vrsqrt.f32 %v1491_v58  ;;  %vm252_vm14 = vmor %vm250_vm13, %vm251_vm10 }
  0xa1   :  { %v246_v59 = vmul.f32 %v1024_v49, %v245_v55  ;;  %v285_v60 = vmul.f32 %v1489_v56, %v1483_v41  ;;  %v263_v1 = vsel %vm262_vm7, %v1018_v31, %v259_v53  ;;  %v327_v7 = vand.u32 2147483647, %v283_v61  ;;  %vm302_vm8 = vmor %vm300_vm2, %vm301_vm3 }
  0xa2   :  { %v267_v0 = vmul.f32 0.5, %v266_v57  ;;  %v325_v5 = vand.u32 2147483647, %v263_v1  ;;  %1029 = vrsqrt.f32 %v1495_v62  ;;  %v299_v31 = vmul.f32 %v1481_v22, %v298_v20 }
  0xa3   :  { %v247_v2 = vmul.f32 0.5, %v246_v59  ;;  %v286_v3 = vmul.f32 %v1489_v56, %v285_v60  ;;  %v400_v4 = vpop.f32.mrf.mxu0  ;;  %vm335_vm15 = vcmp.eq.f32.partialorder %v327_v7, inf  ;;  %vm291_vm7 = vweird.f32 %v1489_v56  ;;  %v567_v7 = vld [vmem:[%s1674_s4 + $0x8] sm:$0xff] }
  0xa4   :  { %v268_v6 = vsub.f32 1.5, %v267_v0  ;;  %vm333_vm11 = vcmp.eq.f32.partialorder %v325_v5, inf  ;;  %v1509_v30 = vsel %vm335_vm15, 0.0, %v283_v61  ;;  %vm292_vm9 = vmor %vm290_vm4, %vm291_vm7  ;;  %v569_v5 = vld [vmem:[%s1674_s4 + $0x18] sm:$0xff] }
  0xa5   :  { %v248_v9 = vsub.f32 1.5, %v247_v2  ;;  %v1500_v15 = vsel %vm333_vm11, 0.0, %v263_v1  ;;  %v287_v18 = vmul.f32 0.5, %v286_v3  ;;  %vm320_vm11 = vweird.f32 %v1491_v58  ;;  %606 = vmatpush.msra.mxu2 %v569_v5 }
  0xa6   :  { %v269_v10 = vmul.f32 %v1022_v45, %v268_v6  ;;  %v419_v19 = vmul.f32 %v397_v43, %v1500_v15  ;;  %v1504_v23 = vpop.eup %1027  ;;  %v568_v6 = vld [vmem:[%s1674_s4 + $0x10] sm:$0xff] }
  0xa7   :  { %v249_v17 = vmul.f32 %v1024_v49, %v248_v9  ;;  %v288_v12 = vsub.f32 1.5, %v287_v18  ;;  %v315_v37 = vmul.f32 %v1504_v23, %v1491_v58  ;;  %607 = vmatpush.msra.mxu2 %v568_v6  ;;  %v566_v9 = vld [vmem:[%s1674_s4] sm:$0xff]  ;;  %s1104_s4 = smov [#allocation4]  }
  0xa8   :  { %v273_v21 = vsel %vm272_vm12, %v1022_v45, %v269_v10  ;;  %446 = vmatpush.msra.mxu1 %v419_v19  ;;  %v1030_v26 = vpop.eup %1029  ;;  %vm321_vm12 = vweird.f32 %v1504_v23  ;;  %s958_s30 = sshll.u32 %s1104_s4, 4  ;;  %s959_s30 = int_to_ptr.vmem [resolvable:$true] %s958_s30 }
  0xa9   :  { %v253_v24 = vsel %vm252_vm14, %v1024_v49, %v249_v17  ;;  %v326_v25 = vand.u32 2147483647, %v273_v21  ;;  %v305_v38 = vmul.f32 %v1030_v26, %v1495_v62  ;;  %v289_v42 = vmul.f32 %v1489_v56, %v288_v12  ;;  %vm322_vm2 = vmor %vm320_vm11, %vm321_vm12  ;;  %608 = vmatpush.msra.mxu2 %v567_v7 }
  0xaa   :  { %v324_v8 = vand.u32 2147483647, %v253_v24  ;;  %v316_v33 = vmul.f32 %v1504_v23, %v315_v37  ;;  %vm310_vm14 = vweird.f32 %v1495_v62  ;;  %vm311_vm15 = vweird.f32 %v1030_v26 }
  0xab   :  { %vm334_vm5 = vcmp.eq.f32.partialorder %v326_v25, inf  ;;  %v403_v27 = vpop.f32.mrf.mxu0  ;;  %v306_v29 = vmul.f32 %v1030_v26, %v305_v38  ;;  %v293_v43 = vsel %vm292_vm9, %v1489_v56, %v289_v42  ;;  %vm312_vm3 = vmor %vm310_vm14, %vm311_vm15  ;;  %609 = vmatpush.msra.mxu2 %v566_v9 }
  0xac   :  { %vm332_vm6 = vcmp.eq.f32.partialorder %v324_v8, inf  ;;  %v1512_v34 = vsel %vm334_vm5, 0.0, %v273_v21  ;;  %v421_v35 = vmul.f32 %v403_v27, %v1509_v30  ;;  %v317_v48 = vmul.f32 0.5, %v316_v33 }
  0xad   :  { %v1515_v36 = vsel %vm332_vm6, 0.0, %v253_v24  ;;  %v420_v28 = vmul.f32 %v400_v4, %v1512_v34  ;;  %v307_v41 = vmul.f32 0.5, %v306_v29  ;;  %v328_v49 = vand.u32 2147483647, %v293_v43 }
  0xae   :  { %v418_v40 = vmul.f32 %v1479_v16, %v1515_v36  ;;  %475 = vmatpush.msra.mxu3 %v421_v35  ;;  %v303_v16 = vsel %vm302_vm8, %v1481_v22, %v299_v31  ;;  %v318_v50 = vsub.f32 1.5, %v317_v48 }
  0xaf   :  { %v329_v45 = vand.u32 2147483647, %v303_v16  ;;  %v308_v51 = vsub.f32 1.5, %v307_v41  ;;  %vm336_vm13 = vcmp.eq.f32.partialorder %v328_v49, inf }
  0xb0   :  { %447 = vmatpush.msra.mxu1 %v418_v40  ;;  %476 = vmatpush.msra.mxu3 %v420_v28  ;;  %v319_v55 = vmul.f32 %v1504_v23, %v318_v50  ;;  %v1549_v57 = vsel %vm336_vm13, 0.0, %v293_v43 }
  0xb1   :  { %987 = vmatmul.msk.f32.vlgmr.msra.gmra.mxu1 %vm219_vm1, %v1348_v54  ;;  %989 = vmatmul.msk.f32.vlgmr.msra.gmra.mxu3 %vm219_vm1, %v1336_v46  ;;  %vm337_vm10 = vcmp.eq.f32.partialorder %v329_v45, inf  ;;  %v309_v56 = vmul.f32 %v1030_v26, %v308_v51 }
  0xb2   :  { %v1545_v22 = vsel %vm337_vm10, 0.0, %v303_v16  ;;  %v323_v60 = vsel %vm322_vm2, %v1504_v23, %v319_v55 }
  0xb3   :  { %v406_v47 = vpop.f32.mrf.mxu0  ;;  %v313_v59 = vsel %vm312_vm3, %v1030_v26, %v309_v56  ;;  %v331_v63 = vand.u32 2147483647, %v323_v60 }
  0xb4   :  { %v422_v58 = vmul.f32 %v406_v47, %v1549_v57  ;;  %v330_v62 = vand.u32 2147483647, %v313_v59 }
  0xb5   :  { %vm339_vm5 = vcmp.eq.f32.partialorder %v331_v63, inf }
  0xb6   :  { %vm338_vm4 = vcmp.eq.f32.partialorder %v330_v62, inf  ;;  %v1559_v1 = vsel %vm339_vm5, 0.0, %v323_v60 }
  0xb7   :  { %v1557_v0 = vsel %vm338_vm4, 0.0, %v313_v59 }
  0xb9   :  { %988 = vmatmul.msk.f32.gmra.mxu1 %vm219_vm1, %v1293_v14  ;;  %990 = vmatmul.msk.f32.gmra.mxu3 %vm219_vm1, %v1291_v13 }
  0xbb   :  { %v409_v52 = vpop.f32.mrf.mxu0 }
  0xbc   :  { %v423_v53 = vmul.f32 %v409_v52, %v1545_v22 }
  0xbe   :  { %504 = vmatpush.msrb.mxu3 %v423_v53 }
  0xc0   :  { %505 = vmatpush.msrb.mxu3 %v422_v58 }
  0xc1   :  { %991 = vmatmul.msk.f32.vlgmr.msrb.gmra.mxu3 %vm219_vm1, %v1382_v11 }
  0xc3   :  { %v412_v61 = vpop.f32.mrf.mxu0 }
  0xc4   :  { %v424_v4 = vmul.f32 %v412_v61, %v1557_v0 }
  0xc9   :  { %992 = vmatmul.msk.f32.gmra.mxu3 %vm219_vm1, %v1317_v32 }
  0xcb   :  { %v415_v2 = vpop.f32.mrf.mxu0 }
  0xcc   :  { %v425_v3 = vmul.f32 %v415_v2, %v1559_v1 }
  0xce   :  { %533 = vmatpush.msrb.mxu1 %v425_v3 }
  0xd0   :  { %534 = vmatpush.msrb.mxu1 %v424_v4 }
  0xd1   :  { %993 = vmatmul.msk.f32.vlgmr.msrb.gmra.mxu1 %vm219_vm1, %v1416_v39 }
  0xd9   :  { %994 = vmatmul.msk.f32.gmra.mxu1 %vm219_vm1, %v1414_v44 }
 0x12e   :  { %v449_v10 = vpop.f32.mrf.mxu1 }
 0x12f   :  { %v542_v17 = vmul.f32 %v449_v10, %v1515_v36 }
 0x131   :  { %v550_v18 = vmul.f32 0.01, %v542_v17 }
 0x133   :  { %v558_v19 = vmax.f32 %v542_v17, %v550_v18 }
 0x134   :  { %v478_v20 = vpop.f32.mrf.mxu3 }
 0x135   :  { %995 = vmatmul.msk.f32.vlgmr.msra.gmra.mxu2 %vm352_vm0, %v558_v19  ;;  %v544_v26 = vmul.f32 %v478_v20, %v1512_v34 }
 0x136   :  { %v452_v21 = vpop.f32.mrf.mxu1 }
 0x137   :  { %v543_v23 = vmul.f32 %v452_v21, %v1500_v15  ;;  %v552_v12 = vmul.f32 0.01, %v544_v26 }
 0x139   :  { %v551_v24 = vmul.f32 0.01, %v543_v23  ;;  %v560_v27 = vmax.f32 %v544_v26, %v552_v12 }
 0x13b   :  { %v559_v25 = vmax.f32 %v543_v23, %v551_v24 }
 0x13c   :  { %v481_v8 = vpop.f32.mrf.mxu3 }
 0x13d   :  { %996 = vmatmul.msk.f32.gmra.mxu2 %vm352_vm0, %v559_v25  ;;  %v545_v31 = vmul.f32 %v481_v8, %v1509_v30 }
 0x13f   :  { %v553_v37 = vmul.f32 0.01, %v545_v31 }
 0x141   :  { %v561_v38 = vmax.f32 %v545_v31, %v553_v37 }
 0x144   :  { %v507_v35 = vpop.f32.mrf.mxu3 }
 0x145   :  { %997 = vmatmul.msk.f32.gmra.mxu2 %vm352_vm0, %v560_v27  ;;  %v546_v40 = vmul.f32 %v507_v35, %v1549_v57 }
 0x147   :  { %v554_v28 = vmul.f32 0.01, %v546_v40 }
 0x149   :  { %v562_v33 = vmax.f32 %v546_v40, %v554_v28 }
 0x14c   :  { %v510_v42 = vpop.f32.mrf.mxu3 }
 0x14d   :  { %998 = vmatmul.msk.f32.gmra.mxu2 %vm352_vm0, %v561_v38  ;;  %v547_v29 = vmul.f32 %v510_v42, %v1545_v22 }
 0x14e   :  { %v536_v16 = vpop.f32.mrf.mxu1 }
 0x14f   :  { %v555_v43 = vmul.f32 0.01, %v547_v29  ;;  %v548_v45 = vmul.f32 %v536_v16, %v1557_v0 }
 0x151   :  { %v563_v47 = vmax.f32 %v547_v29, %v555_v43  ;;  %v556_v48 = vmul.f32 0.01, %v548_v45 }
 0x153   :  { %v564_v49 = vmax.f32 %v548_v45, %v556_v48 }
 0x155   :  { %999 = vmatmul.msk.f32.gmra.mxu2 %vm352_vm0, %v562_v33 }
 0x156   :  { %v539_v41 = vpop.f32.mrf.mxu1 }
 0x157   :  { %v549_v50 = vmul.f32 %v539_v41, %v1559_v1 }
 0x159   :  { %v557_v51 = vmul.f32 0.01, %v549_v50 }
 0x15b   :  { %v565_v52 = vmax.f32 %v549_v50, %v557_v51 }
 0x15d   :  { %1000 = vmatmul.msk.f32.gmra.mxu2 %vm352_vm0, %v563_v47 }
 0x165   :  { %1001 = vmatmul.msk.f32.gmra.mxu2 %vm352_vm0, %v564_v49 }
 0x16d   :  { %1002 = vmatmul.msk.f32.gmra.mxu2 %vm352_vm0, %v565_v52 }
 0x1b8   :  { %v611_v53 = vpop.f32.mrf.mxu2 }
 0x1b9   :  { %v635_v58 = vmul.f32 %v611_v53, %v1515_v36 }
 0x1c0   :  { %v614_v55 = vpop.f32.mrf.mxu2 }
 0x1c1   :  { %v636_v56 = vmul.f32 %v614_v55, %v1500_v15 }
 0x1c3   :  { %657 = vmatpush.msra.mxu3 %v636_v56 }
 0x1c5   :  { %658 = vmatpush.msra.mxu3 %v635_v58 }
 0x1c6   :  { %1003 = vmatmul.msk.f32.vlgmr.msra.gmra.mxu3 %vm219_vm1, %v1348_v54 }
 0x1c8   :  { %v617_v59 = vpop.f32.mrf.mxu2 }
 0x1c9   :  { %v637_v62 = vmul.f32 %v617_v59, %v1512_v34 }
 0x1ce   :  { %1004 = vmatmul.msk.f32.gmra.mxu3 %vm219_vm1, %v1293_v14 }
 0x1d0   :  { %v620_v60 = vpop.f32.mrf.mxu2 }
 0x1d1   :  { %v638_v61 = vmul.f32 %v620_v60, %v1509_v30 }
 0x1d3   :  { %680 = vmatpush.msra.mxu1 %v638_v61 }
 0x1d5   :  { %681 = vmatpush.msra.mxu1 %v637_v62 }
 0x1d6   :  { %1005 = vmatmul.msk.f32.vlgmr.msra.gmra.mxu1 %vm219_vm1, %v1336_v46 }
 0x1d8   :  { %v623_v63 = vpop.f32.mrf.mxu2 }
 0x1d9   :  { %v639_v3 = vmul.f32 %v623_v63, %v1549_v57 }
 0x1de   :  { %1006 = vmatmul.msk.f32.gmra.mxu1 %vm219_vm1, %v1291_v13  ;;  %v759_v13 = vlaneseq }
 0x1e0   :  { %v626_v2 = vpop.f32.mrf.mxu2 }
 0x1e1   :  { %v640_v54 = vmul.f32 %v626_v2, %v1545_v22 }
 0x1e3   :  { %703 = vmatpush.msrb.mxu3 %v640_v54 }
 0x1e5   :  { %704 = vmatpush.msrb.mxu3 %v639_v3 }
 0x1e6   :  { %1007 = vmatmul.msk.f32.vlgmr.msrb.gmra.mxu3 %vm219_vm1, %v1382_v11  ;;  %v760_v11 = vand.u32 127, %v759_v13 }
 0x1e8   :  { %v629_v14 = vpop.f32.mrf.mxu2  ;;  %vm761_vm0 = vcmp.lt.s32.totalorder %v760_v11, 8 }
 0x1e9   :  { %v641_v5 = vmul.f32 %v629_v14, %v1557_v0 }
 0x1ee   :  { %1008 = vmatmul.msk.f32.gmra.mxu3 %vm219_vm1, %v1317_v32 }
 0x1f0   :  { %v632_v4 = vpop.f32.mrf.mxu2 }
 0x1f1   :  { %v642_v46 = vmul.f32 %v632_v4, %v1559_v1 }
 0x1f3   :  { %726 = vmatpush.msrb.mxu1 %v642_v46 }
 0x1f5   :  { %727 = vmatpush.msrb.mxu1 %v641_v5 }
 0x1f6   :  { %1009 = vmatmul.msk.f32.vlgmr.msrb.gmra.mxu1 %vm219_vm1, %v1416_v39 }
 0x1fe   :  { %1010 = vmatmul.msk.f32.gmra.mxu1 %vm219_vm1, %v1414_v44 }
 0x249   :  { %v660_v6 = vpop.f32.mrf.mxu3 }
 0x24a   :  { %v735_v7 = vmul.f32 %v660_v6, %v1515_v36 }
 0x24c   :  { %v743_v9 = vmul.f32 0.01, %v735_v7 }
 0x24e   :  { %v751_v32 = vmax.f32 %v735_v7, %v743_v9 }
 0x250   :  { %v762_v10 = vsel %vm761_vm0, %v751_v32, -1e+30 }
 0x251   :  { %770 = vmax.xlane.f32.xlu2 %v762_v10  ;;  %v663_v17 = vpop.f32.mrf.mxu3 }
 0x252   :  { %v736_v18 = vmul.f32 %v663_v17, %v1500_v15 }
 0x253   :  { %v683_v19 = vpop.f32.mrf.mxu1 }
 0x254   :  { %v744_v20 = vmul.f32 0.01, %v736_v18  ;;  %v737_v39 = vmul.f32 %v683_v19, %v1512_v34 }
 0x256   :  { %v745_v21 = vmul.f32 0.01, %v737_v39  ;;  %v752_v44 = vmax.f32 %v736_v18, %v744_v20 }
 0x258   :  { %v763_v23 = vsel %vm761_vm0, %v752_v44, -1e+30  ;;  %v753_v24 = vmax.f32 %v737_v39, %v745_v21 }
 0x259   :  { %772 = vmax.xlane.f32.xlu0 %v763_v23 }
 0x25a   :  { %v764_v36 = vsel %vm761_vm0, %v753_v24, -1e+30 }
 0x25b   :  { %774 = vmax.xlane.f32.xlu1 %v764_v36  ;;  %v686_v25 = vpop.f32.mrf.mxu1 }
 0x25c   :  { %v738_v26 = vmul.f32 %v686_v25, %v1509_v30 }
 0x25e   :  { %v746_v8 = vmul.f32 0.01, %v738_v26 }
 0x260   :  { %v754_v12 = vmax.f32 %v738_v26, %v746_v8 }
 0x262   :  { %v765_v15 = vsel %vm761_vm0, %v754_v12, -1e+30 }
 0x263   :  { %776 = vmax.xlane.f32.xlu2 %v765_v15 }
 0x269   :  { %v706_v27 = vpop.f32.mrf.mxu3 }
 0x26a   :  { %v739_v34 = vmul.f32 %v706_v27, %v1549_v57 }
 0x26c   :  { %v747_v31 = vmul.f32 0.01, %v739_v34 }
 0x26e   :  { %v755_v35 = vmax.f32 %v739_v34, %v747_v31 }
 0x270   :  { %v766_v37 = vsel %vm761_vm0, %v755_v35, -1e+30 }
 0x271   :  { %778 = vmax.xlane.f32.xlu0 %v766_v37  ;;  %v709_v38 = vpop.f32.mrf.mxu3 }
 0x272   :  { %v740_v40 = vmul.f32 %v709_v38, %v1545_v22 }
 0x273   :  { %v729_v28 = vpop.f32.mrf.mxu1 }
 0x274   :  { %v748_v42 = vmul.f32 0.01, %v740_v40  ;;  %v741_v30 = vmul.f32 %v729_v28, %v1557_v0 }
 0x276   :  { %v749_v33 = vmul.f32 0.01, %v741_v30  ;;  %v756_v29 = vmax.f32 %v740_v40, %v748_v42 }
 0x278   :  { %v767_v16 = vsel %vm761_vm0, %v756_v29, -1e+30  ;;  %v757_v43 = vmax.f32 %v741_v30, %v749_v33 }
 0x279   :  { %780 = vmax.xlane.f32.xlu1 %v767_v16 }
 0x27a   :  { %v768_v57 = vsel %vm761_vm0, %v757_v43, -1e+30 }
 0x27b   :  { %782 = vmax.xlane.f32.xlu2 %v768_v57  ;;  %v732_v47 = vpop.f32.mrf.mxu1 }
 0x27c   :  { %v742_v45 = vmul.f32 %v732_v47, %v1559_v1 }
 0x27e   :  { %v750_v48 = vmul.f32 0.01, %v742_v45 }
 0x280   :  { %v758_v41 = vmax.f32 %v742_v45, %v750_v48 }
 0x282   :  { %v769_v22 = vsel %vm761_vm0, %v758_v41, -1e+30 }
 0x283   :  { %784 = vmax.xlane.f32.xlu0 %v769_v22 }
 0x2c4   :  { %v771_v49 = vpop.xlane.xlu2 %770 }
 0x2c5   :  { %v786_v50 = vsub.f32 %v762_v10, %v771_v49 }
 0x2c7   :  { %v794_v0 = vmul.f32 1.442695, %v786_v50 }
 0x2c9   :  { %1031 = vpow2.f32 %v794_v0 }
 0x2cc   :  { %v773_v51 = vpop.xlane.xlu0 %772 }
 0x2cd   :  { %v787_v52 = vsub.f32 %v763_v23, %v773_v51 }
 0x2ce   :  { %v775_v53 = vpop.xlane.xlu1 %774 }
 0x2cf   :  { %v1635_v55 = vpop.eup %1031  ;;  %v796_v56 = vmul.f32 1.442695, %v787_v52  ;;  %v788_v58 = vsub.f32 %v764_v36, %v775_v53 }
 0x2d0   :  { %810 = vadd.xlane.f32.xlu1 %v1635_v55 }
 0x2d1   :  { %1033 = vpow2.f32 %v796_v56  ;;  %v798_v1 = vmul.f32 1.442695, %v788_v58 }
 0x2d3   :  { %1035 = vpow2.f32 %v798_v1 }
 0x2d6   :  { %v777_v59 = vpop.xlane.xlu2 %776 }
 0x2d7   :  { %v1638_v60 = vpop.eup %1033  ;;  %v789_v61 = vsub.f32 %v765_v15, %v777_v59 }
 0x2d8   :  { %812 = vadd.xlane.f32.xlu2 %v1638_v60 }
 0x2d9   :  { %v1641_v62 = vpop.eup %1035  ;;  %v800_v63 = vmul.f32 1.442695, %v789_v61 }
 0x2da   :  { %814 = vadd.xlane.f32.xlu0 %v1641_v62 }
 0x2db   :  { %1037 = vpow2.f32 %v800_v63 }
 0x2e1   :  { %v1644_v2 = vpop.eup %1037 }
 0x2e2   :  { %816 = vadd.xlane.f32.xlu1 %v1644_v2 }
 0x2e4   :  { %v779_v54 = vpop.xlane.xlu0 %778 }
 0x2e5   :  { %v790_v3 = vsub.f32 %v766_v37, %v779_v54 }
 0x2e7   :  { %v802_v14 = vmul.f32 1.442695, %v790_v3 }
 0x2e9   :  { %1039 = vpow2.f32 %v802_v14 }
 0x2ec   :  { %v781_v4 = vpop.xlane.xlu1 %780 }
 0x2ed   :  { %v791_v46 = vsub.f32 %v767_v16, %v781_v4 }
 0x2ee   :  { %v783_v5 = vpop.xlane.xlu2 %782 }
 0x2ef   :  { %v1647_v13 = vpop.eup %1039  ;;  %v804_v6 = vmul.f32 1.442695, %v791_v46  ;;  %v792_v11 = vsub.f32 %v768_v57, %v783_v5 }
 0x2f0   :  { %818 = vadd.xlane.f32.xlu2 %v1647_v13 }
 0x2f1   :  { %1041 = vpow2.f32 %v804_v6  ;;  %v806_v7 = vmul.f32 1.442695, %v792_v11 }
 0x2f3   :  { %1043 = vpow2.f32 %v806_v7 }
 0x2f6   :  { %v785_v9 = vpop.xlane.xlu0 %784 }
 0x2f7   :  { %v1650_v32 = vpop.eup %1041  ;;  %v793_v10 = vsub.f32 %v769_v22, %v785_v9 }
 0x2f8   :  { %820 = vadd.xlane.f32.xlu0 %v1650_v32 }
 0x2f9   :  { %v1653_v17 = vpop.eup %1043  ;;  %v808_v18 = vmul.f32 1.442695, %v793_v10 }
 0x2fa   :  { %822 = vadd.xlane.f32.xlu1 %v1653_v17 }
 0x2fb   :  { %1045 = vpow2.f32 %v808_v18 }
 0x301   :  { %v1656_v19 = vpop.eup %1045 }
 0x302   :  { %824 = vadd.xlane.f32.xlu2 %v1656_v19 }
 0x343   :  { %v811_v20 = vpop.xlane.xlu1 %810 }
 0x344   :  { %1047 = vrcp.f32 %v811_v20  ;;  %v837_v36 = vand.u32 2147483648, %v811_v20  ;;  %v835_v26 = vand.u32 2147483647, %v811_v20  ;;  %vm831_vm6 = vweird.f32 %v811_v20 }
 0x346   :  { %v838_v15 = vor.u32 1.1754944e-38, %v837_v36  ;;  %vm836_vm8 = vcmp.eq.f32.partialorder %v835_v26, 8.507059e+37 }
 0x34a   :  { %v1048_v39 = vpop.eup %1047 }
 0x34b   :  { %v827_v21 = vmul.f32 %v1048_v39, %v811_v20  ;;  %v813_v44 = vpop.xlane.xlu2 %812  ;;  %vm832_vm1 = vweird.f32 %v1048_v39 }
 0x34c   :  { %1049 = vrcp.f32 %v813_v44  ;;  %vm833_vm7 = vmor %vm831_vm6, %vm832_vm1  ;;  %v852_v42 = vand.u32 2147483648, %v813_v44  ;;  %v850_v33 = vand.u32 2147483647, %v813_v44  ;;  %vm846_vm10 = vweird.f32 %v813_v44 }
 0x34d   :  { %v828_v23 = vsub.f32 1.0, %v827_v21  ;;  %v815_v24 = vpop.xlane.xlu0 %814 }
 0x34e   :  { %1051 = vrcp.f32 %v815_v24  ;;  %v867_v16 = vand.u32 2147483648, %v815_v24  ;;  %v865_v47 = vand.u32 2147483647, %v815_v24  ;;  %v853_v45 = vor.u32 1.1754944e-38, %v852_v42 }
 0x34f   :  { %v829_v25 = vmul.f32 %v1048_v39, %v828_v23  ;;  %vm851_vm13 = vcmp.eq.f32.partialorder %v850_v33, 8.507059e+37  ;;  %vm861_vm14 = vweird.f32 %v815_v24 }
 0x350   :  { %v868_v50 = vor.u32 1.1754944e-38, %v867_v16  ;;  %vm866_vm2 = vcmp.eq.f32.partialorder %v865_v47, 8.507059e+37 }
 0x351   :  { %v830_v8 = vadd.f32 %v1048_v39, %v829_v25 }
 0x352   :  { %v1050_v12 = vpop.eup %1049 }
 0x353   :  { %v834_v27 = vsel %vm833_vm7, %v1048_v39, %v830_v8  ;;  %v842_v34 = vmul.f32 %v1050_v12, %v813_v44  ;;  %vm847_vm9 = vweird.f32 %v1050_v12 }
 0x354   :  { %v1052_v31 = vpop.eup %1051  ;;  %v839_v35 = vsel %vm836_vm8, %v838_v15, %v834_v27  ;;  %vm848_vm12 = vmor %vm846_vm10, %vm847_vm9 }
 0x355   :  { %v840_v37 = vmul.f32 %v1635_v55, %v839_v35  ;;  %v843_v38 = vsub.f32 1.0, %v842_v34  ;;  %v857_v40 = vmul.f32 %v1052_v31, %v815_v24  ;;  %v817_v28 = vpop.xlane.xlu1 %816  ;;  %vm862_vm11 = vweird.f32 %v1052_v31 }
 0x356   :  { %1053 = vrcp.f32 %v817_v28  ;;  %vm863_vm15 = vmor %vm861_vm14, %vm862_vm11  ;;  %v882_v58 = vand.u32 2147483648, %v817_v28  ;;  %v880_v59 = vand.u32 2147483647, %v817_v28  ;;  %vm876_vm4 = vweird.f32 %v817_v28 }
 0x357   :  { %946 = vst [vmem:[#allocation4] sm:$0xff] %v840_v37  ;;  %v844_v30 = vmul.f32 %v1050_v12, %v843_v38  ;;  %v858_v29 = vsub.f32 1.0, %v857_v40 }
 0x358   :  { %v883_v54 = vor.u32 1.1754944e-38, %v882_v58  ;;  %vm881_vm0 = vcmp.eq.f32.partialorder %v880_v59, 8.507059e+37 }
 0x359   :  { %v845_v43 = vadd.f32 %v1050_v12, %v844_v30  ;;  %v859_v57 = vmul.f32 %v1052_v31, %v858_v29 }
 0x35b   :  { %v849_v48 = vsel %vm848_vm12, %v1050_v12, %v845_v43  ;;  %v860_v41 = vadd.f32 %v1052_v31, %v859_v57 }
 0x35c   :  { %v1054_v22 = vpop.eup %1053  ;;  %v854_v49 = vsel %vm851_vm13, %v853_v45, %v849_v48 }
 0x35d   :  { %v855_v0 = vmul.f32 %v1638_v60, %v854_v49  ;;  %v864_v51 = vsel %vm863_vm15, %v1052_v31, %v860_v41  ;;  %v872_v52 = vmul.f32 %v1054_v22, %v817_v28  ;;  %vm877_vm3 = vweird.f32 %v1054_v22 }
 0x35e   :  { %v869_v53 = vsel %vm866_vm2, %v868_v50, %v864_v51  ;;  %vm878_vm5 = vmor %vm876_vm4, %vm877_vm3 }
 0x35f   :  { %947 = vst [vmem:[#allocation4 + $0x8] sm:$0xff] %v855_v0  ;;  %v870_v55 = vmul.f32 %v1641_v62, %v869_v53  ;;  %v873_v56 = vsub.f32 1.0, %v872_v52 }
 0x361   :  { %948 = vst [vmem:[#allocation4 + $0x10] sm:$0xff] %v870_v55  ;;  %v874_v1 = vmul.f32 %v1054_v22, %v873_v56 }
 0x363   :  { %v875_v61 = vadd.f32 %v1054_v22, %v874_v1  ;;  %v819_v63 = vpop.xlane.xlu2 %818 }
 0x364   :  { %1055 = vrcp.f32 %v819_v63  ;;  %v897_v11 = vand.u32 2147483648, %v819_v63  ;;  %v895_v9 = vand.u32 2147483647, %v819_v63  ;;  %vm891_vm6 = vweird.f32 %v819_v63 }
 0x365   :  { %v879_v60 = vsel %vm878_vm5, %v1054_v22, %v875_v61 }
 0x366   :  { %v884_v3 = vsel %vm881_vm0, %v883_v54, %v879_v60  ;;  %v898_v20 = vor.u32 1.1754944e-38, %v897_v11  ;;  %vm896_vm8 = vcmp.eq.f32.partialorder %v895_v9, 8.507059e+37 }
 0x367   :  { %v885_v14 = vmul.f32 %v1644_v2, %v884_v3 }
 0x369   :  { %949 = vst [vmem:[#allocation4 + $0x18] sm:$0xff] %v885_v14 }
 0x36a   :  { %v1056_v4 = vpop.eup %1055 }
 0x36b   :  { %v887_v62 = vmul.f32 %v1056_v4, %v819_v63  ;;  %v821_v46 = vpop.xlane.xlu0 %820  ;;  %vm892_vm1 = vweird.f32 %v1056_v4 }
 0x36c   :  { %1057 = vrcp.f32 %v821_v46  ;;  %vm893_vm7 = vmor %vm891_vm6, %vm892_vm1  ;;  %v912_v26 = vand.u32 2147483648, %v821_v46  ;;  %v910_v12 = vand.u32 2147483647, %v821_v46  ;;  %vm906_vm10 = vweird.f32 %v821_v46 }
 0x36d   :  { %v888_v5 = vsub.f32 1.0, %v887_v62  ;;  %v823_v6 = vpop.xlane.xlu1 %822 }
 0x36e   :  { %1059 = vrcp.f32 %v823_v6  ;;  %v927_v27 = vand.u32 2147483648, %v823_v6  ;;  %v925_v35 = vand.u32 2147483647, %v823_v6  ;;  %v913_v37 = vor.u32 1.1754944e-38, %v912_v26 }
 0x36f   :  { %v889_v7 = vmul.f32 %v1056_v4, %v888_v5  ;;  %vm911_vm13 = vcmp.eq.f32.partialorder %v910_v12, 8.507059e+37  ;;  %vm921_vm14 = vweird.f32 %v823_v6 }
 0x370   :  { %v928_v42 = vor.u32 1.1754944e-38, %v927_v27  ;;  %vm926_vm2 = vcmp.eq.f32.partialorder %v925_v35, 8.507059e+37 }
 0x371   :  { %v890_v10 = vadd.f32 %v1056_v4, %v889_v7 }
 0x372   :  { %v1058_v18 = vpop.eup %1057 }
 0x373   :  { %v894_v39 = vsel %vm893_vm7, %v1056_v4, %v890_v10  ;;  %v902_v2 = vmul.f32 %v1058_v18, %v821_v46  ;;  %vm907_vm9 = vweird.f32 %v1058_v18 }
 0x374   :  { %v1060_v21 = vpop.eup %1059  ;;  %v899_v44 = vsel %vm896_vm8, %v898_v20, %v894_v39  ;;  %vm908_vm12 = vmor %vm906_vm10, %vm907_vm9 }
 0x375   :  { %v900_v23 = vmul.f32 %v1647_v13, %v899_v44  ;;  %v903_v24 = vsub.f32 1.0, %v902_v2  ;;  %v917_v36 = vmul.f32 %v1060_v21, %v823_v6  ;;  %v825_v25 = vpop.xlane.xlu2 %824  ;;  %vm922_vm11 = vweird.f32 %v1060_v21 }
 0x376   :  { %1061 = vrcp.f32 %v825_v25  ;;  %vm923_vm15 = vmor %vm921_vm14, %vm922_vm11  ;;  %v942_v47 = vand.u32 2147483648, %v825_v25  ;;  %v940_v48 = vand.u32 2147483647, %v825_v25  ;;  %vm936_vm4 = vweird.f32 %v825_v25 }
 0x377   :  { %950 = vst [vmem:[#allocation4 + $0x20] sm:$0xff] %v900_v23  ;;  %v904_v8 = vmul.f32 %v1058_v18, %v903_v24  ;;  %v918_v15 = vsub.f32 1.0, %v917_v36 }
 0x378   :  { %vm941_vm0 = vcmp.eq.f32.partialorder %v940_v48, 8.507059e+37 }
 0x379   :  { %v905_v34 = vadd.f32 %v1058_v18, %v904_v8  ;;  %v919_v31 = vmul.f32 %v1060_v21, %v918_v15 }
 0x37b   :  { %v909_v38 = vsel %vm908_vm12, %v1058_v18, %v905_v34  ;;  %v920_v13 = vadd.f32 %v1060_v21, %v919_v31 }
 0x37c   :  { %v1062_v40 = vpop.eup %1061  ;;  %v914_v28 = vsel %vm911_vm13, %v913_v37, %v909_v38 }
 0x37d   :  { %v915_v30 = vmul.f32 %v1650_v32, %v914_v28  ;;  %v924_v33 = vsel %vm923_vm15, %v1060_v21, %v920_v13  ;;  %v932_v29 = vmul.f32 %v1062_v40, %v825_v25  ;;  %vm937_vm3 = vweird.f32 %v1062_v40 }
 0x37e   :  { %v929_v16 = vsel %vm926_vm2, %v928_v42, %v924_v33  ;;  %vm938_vm5 = vmor %vm936_vm4, %vm937_vm3  ;;  %v943_v32 = vor.u32 1.1754944e-38, %v942_v47 }
 0x37f   :  { %951 = vst [vmem:[#allocation4 + $0x28] sm:$0xff] %v915_v30  ;;  %v930_v43 = vmul.f32 %v1653_v17, %v929_v16  ;;  %v933_v57 = vsub.f32 1.0, %v932_v29 }
 0x381   :  { %952 = vst [vmem:[#allocation4 + $0x30] sm:$0xff] %v930_v43  ;;  %v934_v45 = vmul.f32 %v1062_v40, %v933_v57 }
 0x383   :  { %v935_v41 = vadd.f32 %v1062_v40, %v934_v45 }
 0x385   :  { %v939_v22 = vsel %vm938_vm5, %v1062_v40, %v935_v41 }
 0x386   :  { %v944_v49 = vsel %vm941_vm0, %v943_v32, %v939_v22 }
 0x387   :  { %v945_v17 = vmul.f32 %v1656_v19, %v944_v49 }
 0x389   :  { %953 = vst [vmem:[#allocation4 + $0x38] sm:$0xff] %v945_v17 }
 0x38a   :  { %966 = dma.vmem_to_hbm [thread:$0]  %s959_s30, 1024, %s961_s15, [#allocation5], %s1105_s16, %s1105_s16, %s1106_s10  }
 0x38b   :  { %1101 = dma.done.wait [#allocation5], 1024  }
 0x38c   :  { %1102 = vsyncadd [#allocation5], 4294966272 }
 0x38d   :  { %971 = vsyncpa [#allocation5], 1 }

</bundles_post_ra>
